<compile_context>
chip_gen: v5e
topology: v5e:2x2
jax: 0.10.0
libtpu: 0.0.40
codegen_flags: <defaults>
</compile_context>

<pallas_src>
import functools

import jax
import jax.numpy as jnp
from jax.experimental import pallas as pl
from jax.experimental.pallas import tpu as pltpu

IN_DIM = 28 * 28          # 784
IN_PAD = 896              # 7 * 128: layer-1 K padded for full MXU passes
HID = 128
NUM_CLASSES = 10
CLS_PAD = 128             # final layer padded to a full lane width


def _round_up(n, m):
    return ((n + m - 1) // m) * m


def _mlp_kernel(x_ref,
                w1_ref, b1_ref, w2_ref, b2_ref, w3_ref, b3_ref,
                w4_ref, b4_ref, w5_ref, b5_ref, w6_ref, b6_ref,
                out_ref):
    """Fused 6-layer MLP (bf16 matmuls, f32 accumulation) + masked log_softmax."""
    h = x_ref[...]                                   # (tb, IN_PAD) bf16

    def dense(h_bf16, w_ref, b_ref):
        # bf16 x bf16 -> f32 accumulation on the MXU; bias is f32 and
        # broadcasts over the batch sublanes.
        y = jnp.dot(h_bf16, w_ref[...], preferred_element_type=jnp.float32)
        return y + b_ref[...]

    h = jnp.maximum(dense(h, w1_ref, b1_ref), 0.0).astype(jnp.bfloat16)
    h = jnp.maximum(dense(h, w2_ref, b2_ref), 0.0).astype(jnp.bfloat16)
    h = jnp.maximum(dense(h, w3_ref, b3_ref), 0.0).astype(jnp.bfloat16)
    h = jnp.maximum(dense(h, w4_ref, b4_ref), 0.0).astype(jnp.bfloat16)
    h = jnp.maximum(dense(h, w5_ref, b5_ref), 0.0).astype(jnp.bfloat16)

    logits = dense(h, w6_ref, b6_ref)                # (tb, 128) f32

    # log_softmax over the first NUM_CLASSES lanes only, all in f32.
    lane = jax.lax.broadcasted_iota(jnp.int32, logits.shape, dimension=1)
    valid = lane < NUM_CLASSES
    masked = jnp.where(valid, logits, jnp.float32(-1e30))
    m = jnp.max(masked, axis=-1, keepdims=True)
    e = jnp.where(valid, jnp.exp(masked - m), 0.0)
    lse = jnp.log(jnp.sum(e, axis=-1, keepdims=True)) + m
    # Zero the padded lanes so the lane-dense (tb, 128) output is directly usable.
    out_ref[...] = jnp.where(valid, logits - lse, 0.0)


def init_params(key):
    """Deterministic PyTorch-style (U[-1/sqrt(fan_in), 1/sqrt(fan_in)]) init, f32."""
    dims = [(IN_DIM, HID), (HID, HID), (HID, HID),
            (HID, HID), (HID, HID), (HID, NUM_CLASSES)]
    params = []
    for fan_in, fan_out in dims:
        key, kw, kb = jax.random.split(key, 3)
        bound = 1.0 / jnp.sqrt(jnp.float32(fan_in))
        w = jax.random.uniform(kw, (fan_in, fan_out), jnp.float32, -bound, bound)
        b = jax.random.uniform(kb, (1, fan_out), jnp.float32, -bound, bound)
        params.append((w, b))
    return params


def prepare_params(params):
    """One-time: pad K (784->896) and class lanes (10->128), cast weights to bf16."""
    prepped = []
    last = len(params) - 1
    for idx, (w, b) in enumerate(params):
        if idx == 0:
            w = jnp.zeros((IN_PAD, HID), jnp.float32).at[:IN_DIM, :].set(w)
        if idx == last:
            w = jnp.zeros((HID, CLS_PAD), jnp.float32).at[:, :NUM_CLASSES].set(w)
            b = jnp.zeros((1, CLS_PAD), jnp.float32).at[:, :NUM_CLASSES].set(b)
        prepped.append((w.astype(jnp.bfloat16), b.astype(jnp.float32)))
    return prepped


@functools.partial(jax.jit, static_argnames=("tb", "return_padded"))
def neural_net_forward(x, prepped_params, *, tb=256, return_padded=False):
    """x: (B, 784) f32 -> (B, 10) f32 log-probabilities (or padded (B_pad, 128))."""
    B = x.shape[0]

    # Cast once, pad features to IN_PAD lanes.
    x = x.astype(jnp.bfloat16)
    if x.shape[1] < IN_PAD:
        x = jnp.pad(x, ((0, 0), (0, IN_PAD - x.shape[1])))

    # Batch tiling: big tile by default (full MXU rows, few grid steps);
    # shrink to a multiple of 8 for small batches, pad B up to a tile multiple.
    tb_eff = min(tb, _round_up(B, 8))
    B_pad = _round_up(B, tb_eff)
    if B_pad != B:
        x = jnp.pad(x, ((0, B_pad - B), (0, 0)))

    flat_params = [a for wb in prepped_params for a in wb]

    # Weights/biases: whole array as one block, constant block index -> stays
    # resident in VMEM across all grid steps (no per-step re-DMA).
    full_spec = lambda shape: pl.BlockSpec(shape, lambda i: (0, 0))
    in_specs = [pl.BlockSpec((tb_eff, IN_PAD), lambda i: (i, 0))]
    for (w, b) in prepped_params:
        in_specs.append(full_spec(w.shape))
        in_specs.append(full_spec(b.shape))

    out_padded = pl.pallas_call(
        _mlp_kernel,
        out_shape=jax.ShapeDtypeStruct((B_pad, CLS_PAD), jnp.float32),
        grid=(B_pad // tb_eff,),
        in_specs=in_specs,
        out_specs=pl.BlockSpec((tb_eff, CLS_PAD), lambda i: (i, 0)),
        compiler_params=pltpu.CompilerParams(
            dimension_semantics=("parallel",)),   # shards batch tiles across TCs (v7x)
    )(x, *flat_params)

    if return_padded:
        # Lane-dense (B_pad, 128); class lanes 10..127 are exact zeros.
        # (Padded batch rows carry log_softmax of zero-logits; slice rows as needed.)
        return out_padded
    return out_padded[:B, :NUM_CLASSES]


def reference_forward(x, prepped_params):
    """Plain-JAX reference with the same bf16-weight / f32-accumulate semantics."""
    h = x.astype(jnp.bfloat16)
    if h.shape[1] < IN_PAD:
        h = jnp.pad(h, ((0, 0), (0, IN_PAD - h.shape[1])))
    for (w, b) in prepped_params[:-1]:
        y = jnp.dot(h, w, preferred_element_type=jnp.float32) + b
        h = jnp.maximum(y, 0.0).astype(jnp.bfloat16)
    w6, b6 = prepped_params[-1]
    logits = jnp.dot(h, w6, preferred_element_type=jnp.float32) + b6
    logits = logits[:, :NUM_CLASSES]
    return jax.nn.log_softmax(logits, axis=1)


if __name__ == "__main__":
    key = jax.random.PRNGKey(0)
    kparam, kx = jax.random.split(key)

    params = init_params(kparam)
    prepped = prepare_params(params)

    batch = 8
    x = jax.random.normal(kx, (batch, IN_DIM), jnp.float32)

    out = neural_net_forward(x, prepped)
    out = jax.block_until_ready(out)

    ref = reference_forward(x, prepped)
    assert out.shape == (batch, NUM_CLASSES), out.shape
    max_diff = jnp.max(jnp.abs(out - ref))
    assert jnp.allclose(out, ref, atol=1e-2, rtol=1e-2), (
        f"mismatch vs reference, max abs diff = {max_diff}")

    print("KERNEL_OK")
</pallas_src>

<mosaic_0001>
module attributes {stable_mosaic.version = 11 : i64} {
  func.func @_mlp_kernel(%arg0: i32, %arg1: memref<8x896xbf16, #tpu.memory_space<vmem>>, %arg2: memref<896x128xbf16, #tpu.memory_space<vmem>>, %arg3: memref<1x128xf32, #tpu.memory_space<vmem>>, %arg4: memref<128x128xbf16, #tpu.memory_space<vmem>>, %arg5: memref<1x128xf32, #tpu.memory_space<vmem>>, %arg6: memref<128x128xbf16, #tpu.memory_space<vmem>>, %arg7: memref<1x128xf32, #tpu.memory_space<vmem>>, %arg8: memref<128x128xbf16, #tpu.memory_space<vmem>>, %arg9: memref<1x128xf32, #tpu.memory_space<vmem>>, %arg10: memref<128x128xbf16, #tpu.memory_space<vmem>>, %arg11: memref<1x128xf32, #tpu.memory_space<vmem>>, %arg12: memref<128x128xbf16, #tpu.memory_space<vmem>>, %arg13: memref<1x128xf32, #tpu.memory_space<vmem>>, %arg14: memref<8x128xf32, #tpu.memory_space<vmem>>) attributes {dimension_semantics = [#tpu.dimension_semantics<parallel>], iteration_bounds = array<i64: 1>, scalar_prefetch = 0 : i64, scratch_operands = 0 : i64, tpu.core_type = #tpu.core_type<tc>, window_params = [{transform_indices = @transform_0, window_bounds = array<i64: 8, 896>}, {pipeline_mode = #tpu.pipeline_mode<synchronous>, transform_indices = @transform_1, window_bounds = array<i64: 896, 128>}, {pipeline_mode = #tpu.pipeline_mode<synchronous>, transform_indices = @transform_2, window_bounds = array<i64: 1, 128>}, {pipeline_mode = #tpu.pipeline_mode<synchronous>, transform_indices = @transform_3, window_bounds = array<i64: 128, 128>}, {pipeline_mode = #tpu.pipeline_mode<synchronous>, transform_indices = @transform_4, window_bounds = array<i64: 1, 128>}, {pipeline_mode = #tpu.pipeline_mode<synchronous>, transform_indices = @transform_5, window_bounds = array<i64: 128, 128>}, {pipeline_mode = #tpu.pipeline_mode<synchronous>, transform_indices = @transform_6, window_bounds = array<i64: 1, 128>}, {pipeline_mode = #tpu.pipeline_mode<synchronous>, transform_indices = @transform_7, window_bounds = array<i64: 128, 128>}, {pipeline_mode = #tpu.pipeline_mode<synchronous>, transform_indices = @transform_8, window_bounds = array<i64: 1, 128>}, {pipeline_mode = #tpu.pipeline_mode<synchronous>, transform_indices = @transform_9, window_bounds = array<i64: 128, 128>}, {pipeline_mode = #tpu.pipeline_mode<synchronous>, transform_indices = @transform_10, window_bounds = array<i64: 1, 128>}, {pipeline_mode = #tpu.pipeline_mode<synchronous>, transform_indices = @transform_11, window_bounds = array<i64: 128, 128>}, {pipeline_mode = #tpu.pipeline_mode<synchronous>, transform_indices = @transform_12, window_bounds = array<i64: 1, 128>}, {transform_indices = @transform_13, window_bounds = array<i64: 8, 128>}]} {
    %c0 = arith.constant 0 : index
    %c0_0 = arith.constant 0 : index
    %0 = vector.load %arg1[%c0, %c0_0] : memref<8x896xbf16, #tpu.memory_space<vmem>>, vector<8x896xbf16>
    %c0_1 = arith.constant 0 : index
    %c0_2 = arith.constant 0 : index
    %1 = vector.load %arg2[%c0_1, %c0_2] : memref<896x128xbf16, #tpu.memory_space<vmem>>, vector<896x128xbf16>
    %cst = arith.constant dense<0.000000e+00> : vector<8x128xf32>
    %2 = tpu.matmul %0, %1, %cst {dimension_numbers = #tpu.dot_dimension_numbers<[1], [0], [0], [1], [0, 0, 1, 1], [], []>} : vector<8x896xbf16>, vector<896x128xbf16>, vector<8x128xf32> -> vector<8x128xf32>
    %c0_3 = arith.constant 0 : index
    %c0_4 = arith.constant 0 : index
    %3 = vector.load %arg3[%c0_3, %c0_4] : memref<1x128xf32, #tpu.memory_space<vmem>>, vector<1x128xf32>
    %4 = vector.broadcast %3 : vector<1x128xf32> to vector<8x128xf32>
    %5 = arith.addf %2, %4 : vector<8x128xf32>
    %cst_5 = arith.constant 0.000000e+00 : f32
    %6 = vector.broadcast %cst_5 : f32 to vector<8x128xf32>
    %7 = arith.maximumf %5, %6 : vector<8x128xf32>
    %8 = arith.truncf %7 : vector<8x128xf32> to vector<8x128xbf16>
    %c0_6 = arith.constant 0 : index
    %c0_7 = arith.constant 0 : index
    %9 = vector.load %arg4[%c0_6, %c0_7] : memref<128x128xbf16, #tpu.memory_space<vmem>>, vector<128x128xbf16>
    %cst_8 = arith.constant dense<0.000000e+00> : vector<8x128xf32>
    %10 = tpu.matmul %8, %9, %cst_8 {dimension_numbers = #tpu.dot_dimension_numbers<[1], [0], [0], [1], [0, 0, 1, 1], [], []>} : vector<8x128xbf16>, vector<128x128xbf16>, vector<8x128xf32> -> vector<8x128xf32>
    %c0_9 = arith.constant 0 : index
    %c0_10 = arith.constant 0 : index
    %11 = vector.load %arg5[%c0_9, %c0_10] : memref<1x128xf32, #tpu.memory_space<vmem>>, vector<1x128xf32>
    %12 = vector.broadcast %11 : vector<1x128xf32> to vector<8x128xf32>
    %13 = arith.addf %10, %12 : vector<8x128xf32>
    %cst_11 = arith.constant 0.000000e+00 : f32
    %14 = vector.broadcast %cst_11 : f32 to vector<8x128xf32>
    %15 = arith.maximumf %13, %14 : vector<8x128xf32>
    %16 = arith.truncf %15 : vector<8x128xf32> to vector<8x128xbf16>
    %c0_12 = arith.constant 0 : index
    %c0_13 = arith.constant 0 : index
    %17 = vector.load %arg6[%c0_12, %c0_13] : memref<128x128xbf16, #tpu.memory_space<vmem>>, vector<128x128xbf16>
    %cst_14 = arith.constant dense<0.000000e+00> : vector<8x128xf32>
    %18 = tpu.matmul %16, %17, %cst_14 {dimension_numbers = #tpu.dot_dimension_numbers<[1], [0], [0], [1], [0, 0, 1, 1], [], []>} : vector<8x128xbf16>, vector<128x128xbf16>, vector<8x128xf32> -> vector<8x128xf32>
    %c0_15 = arith.constant 0 : index
    %c0_16 = arith.constant 0 : index
    %19 = vector.load %arg7[%c0_15, %c0_16] : memref<1x128xf32, #tpu.memory_space<vmem>>, vector<1x128xf32>
    %20 = vector.broadcast %19 : vector<1x128xf32> to vector<8x128xf32>
    %21 = arith.addf %18, %20 : vector<8x128xf32>
    %cst_17 = arith.constant 0.000000e+00 : f32
    %22 = vector.broadcast %cst_17 : f32 to vector<8x128xf32>
    %23 = arith.maximumf %21, %22 : vector<8x128xf32>
    %24 = arith.truncf %23 : vector<8x128xf32> to vector<8x128xbf16>
    %c0_18 = arith.constant 0 : index
    %c0_19 = arith.constant 0 : index
    %25 = vector.load %arg8[%c0_18, %c0_19] : memref<128x128xbf16, #tpu.memory_space<vmem>>, vector<128x128xbf16>
    %cst_20 = arith.constant dense<0.000000e+00> : vector<8x128xf32>
    %26 = tpu.matmul %24, %25, %cst_20 {dimension_numbers = #tpu.dot_dimension_numbers<[1], [0], [0], [1], [0, 0, 1, 1], [], []>} : vector<8x128xbf16>, vector<128x128xbf16>, vector<8x128xf32> -> vector<8x128xf32>
    %c0_21 = arith.constant 0 : index
    %c0_22 = arith.constant 0 : index
    %27 = vector.load %arg9[%c0_21, %c0_22] : memref<1x128xf32, #tpu.memory_space<vmem>>, vector<1x128xf32>
    %28 = vector.broadcast %27 : vector<1x128xf32> to vector<8x128xf32>
    %29 = arith.addf %26, %28 : vector<8x128xf32>
    %cst_23 = arith.constant 0.000000e+00 : f32
    %30 = vector.broadcast %cst_23 : f32 to vector<8x128xf32>
    %31 = arith.maximumf %29, %30 : vector<8x128xf32>
    %32 = arith.truncf %31 : vector<8x128xf32> to vector<8x128xbf16>
    %c0_24 = arith.constant 0 : index
    %c0_25 = arith.constant 0 : index
    %33 = vector.load %arg10[%c0_24, %c0_25] : memref<128x128xbf16, #tpu.memory_space<vmem>>, vector<128x128xbf16>
    %cst_26 = arith.constant dense<0.000000e+00> : vector<8x128xf32>
    %34 = tpu.matmul %32, %33, %cst_26 {dimension_numbers = #tpu.dot_dimension_numbers<[1], [0], [0], [1], [0, 0, 1, 1], [], []>} : vector<8x128xbf16>, vector<128x128xbf16>, vector<8x128xf32> -> vector<8x128xf32>
    %c0_27 = arith.constant 0 : index
    %c0_28 = arith.constant 0 : index
    %35 = vector.load %arg11[%c0_27, %c0_28] : memref<1x128xf32, #tpu.memory_space<vmem>>, vector<1x128xf32>
    %36 = vector.broadcast %35 : vector<1x128xf32> to vector<8x128xf32>
    %37 = arith.addf %34, %36 : vector<8x128xf32>
    %cst_29 = arith.constant 0.000000e+00 : f32
    %38 = vector.broadcast %cst_29 : f32 to vector<8x128xf32>
    %39 = arith.maximumf %37, %38 : vector<8x128xf32>
    %40 = arith.truncf %39 : vector<8x128xf32> to vector<8x128xbf16>
    %c0_30 = arith.constant 0 : index
    %c0_31 = arith.constant 0 : index
    %41 = vector.load %arg12[%c0_30, %c0_31] : memref<128x128xbf16, #tpu.memory_space<vmem>>, vector<128x128xbf16>
    %cst_32 = arith.constant dense<0.000000e+00> : vector<8x128xf32>
    %42 = tpu.matmul %40, %41, %cst_32 {dimension_numbers = #tpu.dot_dimension_numbers<[1], [0], [0], [1], [0, 0, 1, 1], [], []>} : vector<8x128xbf16>, vector<128x128xbf16>, vector<8x128xf32> -> vector<8x128xf32>
    %c0_33 = arith.constant 0 : index
    %c0_34 = arith.constant 0 : index
    %43 = vector.load %arg13[%c0_33, %c0_34] : memref<1x128xf32, #tpu.memory_space<vmem>>, vector<1x128xf32>
    %44 = vector.broadcast %43 : vector<1x128xf32> to vector<8x128xf32>
    %45 = arith.addf %42, %44 : vector<8x128xf32>
    %46 = tpu.iota {dimensions = array<i32: 1>} : vector<8x128xi32>
    %c10_i32 = arith.constant 10 : i32
    %47 = vector.broadcast %c10_i32 : i32 to vector<8x128xi32>
    %48 = arith.cmpi slt, %46, %47 : vector<8x128xi32>
    %cst_35 = arith.constant -1.000000e+30 : f32
    %49 = vector.broadcast %cst_35 : f32 to vector<8x128xf32>
    %50 = arith.select %48, %45, %49 : vector<8x128xi1>, vector<8x128xf32>
    %cst_36 = arith.constant dense<0xFF800000> : vector<8xf32>
    %51 = vector.multi_reduction <maximumf>, %50, %cst_36 [1] : vector<8x128xf32> to vector<8xf32>
    %52 = vector.shape_cast %51 : vector<8xf32> to vector<8x1xf32>
    %53 = vector.broadcast %52 : vector<8x1xf32> to vector<8x128xf32>
    %54 = arith.subf %50, %53 : vector<8x128xf32>
    %55 = math.exp %54 : vector<8x128xf32>
    %cst_37 = arith.constant 0.000000e+00 : f32
    %56 = vector.broadcast %cst_37 : f32 to vector<8x128xf32>
    %57 = arith.select %48, %55, %56 : vector<8x128xi1>, vector<8x128xf32>
    %cst_38 = arith.constant dense<0.000000e+00> : vector<8xf32>
    %58 = vector.multi_reduction <add>, %57, %cst_38 [1] : vector<8x128xf32> to vector<8xf32>
    %59 = vector.shape_cast %58 : vector<8xf32> to vector<8x1xf32>
    %60 = math.log %59 : vector<8x1xf32>
    %61 = arith.addf %60, %52 : vector<8x1xf32>
    %62 = vector.broadcast %61 : vector<8x1xf32> to vector<8x128xf32>
    %63 = arith.subf %45, %62 : vector<8x128xf32>
    %cst_39 = arith.constant 0.000000e+00 : f32
    %64 = vector.broadcast %cst_39 : f32 to vector<8x128xf32>
    %65 = arith.select %48, %63, %64 : vector<8x128xi1>, vector<8x128xf32>
    %c0_40 = arith.constant 0 : index
    %c0_41 = arith.constant 0 : index
    %66 = vector.load %arg14[%c0_40, %c0_41] : memref<8x128xf32, #tpu.memory_space<vmem>>, vector<8x128xf32>
    tpu.vector_store %arg14[%c0_40, %c0_41], %65 {strides = array<i32>} : memref<8x128xf32, #tpu.memory_space<vmem>>, vector<8x128xf32>,
    return
  }
  func.func @transform_0(%arg0: i32) -> (i32, i32) {
    %c0_i32 = arith.constant 0 : i32
    %c0_i32_0 = arith.constant 0 : i32
    return %arg0, %c0_i32 : i32, i32
  }
  func.func @transform_1(%arg0: i32) -> (i32, i32) {
    %c0_i32 = arith.constant 0 : i32
    %c0_i32_0 = arith.constant 0 : i32
    %c0_i32_1 = arith.constant 0 : i32
    return %c0_i32, %c0_i32_0 : i32, i32
  }
  func.func @transform_2(%arg0: i32) -> (i32, i32) {
    %c0_i32 = arith.constant 0 : i32
    %c0_i32_0 = arith.constant 0 : i32
    %c0_i32_1 = arith.constant 0 : i32
    return %c0_i32, %c0_i32_0 : i32, i32
  }
  func.func @transform_3(%arg0: i32) -> (i32, i32) {
    %c0_i32 = arith.constant 0 : i32
    %c0_i32_0 = arith.constant 0 : i32
    %c0_i32_1 = arith.constant 0 : i32
    return %c0_i32, %c0_i32_0 : i32, i32
  }
  func.func @transform_4(%arg0: i32) -> (i32, i32) {
    %c0_i32 = arith.constant 0 : i32
    %c0_i32_0 = arith.constant 0 : i32
    %c0_i32_1 = arith.constant 0 : i32
    return %c0_i32, %c0_i32_0 : i32, i32
  }
  func.func @transform_5(%arg0: i32) -> (i32, i32) {
    %c0_i32 = arith.constant 0 : i32
    %c0_i32_0 = arith.constant 0 : i32
    %c0_i32_1 = arith.constant 0 : i32
    return %c0_i32, %c0_i32_0 : i32, i32
  }
  func.func @transform_6(%arg0: i32) -> (i32, i32) {
    %c0_i32 = arith.constant 0 : i32
    %c0_i32_0 = arith.constant 0 : i32
    %c0_i32_1 = arith.constant 0 : i32
    return %c0_i32, %c0_i32_0 : i32, i32
  }
  func.func @transform_7(%arg0: i32) -> (i32, i32) {
    %c0_i32 = arith.constant 0 : i32
    %c0_i32_0 = arith.constant 0 : i32
    %c0_i32_1 = arith.constant 0 : i32
    return %c0_i32, %c0_i32_0 : i32, i32
  }
  func.func @transform_8(%arg0: i32) -> (i32, i32) {
    %c0_i32 = arith.constant 0 : i32
    %c0_i32_0 = arith.constant 0 : i32
    %c0_i32_1 = arith.constant 0 : i32
    return %c0_i32, %c0_i32_0 : i32, i32
  }
  func.func @transform_9(%arg0: i32) -> (i32, i32) {
    %c0_i32 = arith.constant 0 : i32
    %c0_i32_0 = arith.constant 0 : i32
    %c0_i32_1 = arith.constant 0 : i32
    return %c0_i32, %c0_i32_0 : i32, i32
  }
  func.func @transform_10(%arg0: i32) -> (i32, i32) {
    %c0_i32 = arith.constant 0 : i32
    %c0_i32_0 = arith.constant 0 : i32
    %c0_i32_1 = arith.constant 0 : i32
    return %c0_i32, %c0_i32_0 : i32, i32
  }
  func.func @transform_11(%arg0: i32) -> (i32, i32) {
    %c0_i32 = arith.constant 0 : i32
    %c0_i32_0 = arith.constant 0 : i32
    %c0_i32_1 = arith.constant 0 : i32
    return %c0_i32, %c0_i32_0 : i32, i32
  }
  func.func @transform_12(%arg0: i32) -> (i32, i32) {
    %c0_i32 = arith.constant 0 : i32
    %c0_i32_0 = arith.constant 0 : i32
    %c0_i32_1 = arith.constant 0 : i32
    return %c0_i32, %c0_i32_0 : i32, i32
  }
  func.func @transform_13(%arg0: i32) -> (i32, i32) {
    %c0_i32 = arith.constant 0 : i32
    %c0_i32_0 = arith.constant 0 : i32
    return %arg0, %c0_i32 : i32, i32
  }
}

</mosaic_0001>

<bundles_post_ra>
// kernel: neural_net_forward.1
= control target key start
LH: loop header
LB: loop body
LE: loop exit
PB: predicated region body
PF: predicated region fallthrough
CT: control target
= control target key end

     0   :  { %18 = vsyncpa [#allocation3], 0  ;;  %s1930_s0 = inlined_call_operand.vmem [shape: bf16[8,896], index: 0, kind: input, shape index: {}]   ;;  %s1931_s1 = inlined_call_operand.hbm [shape: bf16[896,128], index: 1, kind: input, shape index: {}]   ;;  %s1932_s2 = inlined_call_operand.vmem [shape: f32[1,128], index: 2, kind: input, shape index: {}]   ;;  %s1933_s3 = inlined_call_operand.vmem [shape: bf16[128,128], index: 3, kind: input, shape index: {}]   ;;  %s1934_s4 = inlined_call_operand.vmem [shape: f32[1,128], index: 4, kind: input, shape index: {}]   ;;  %s1935_s5 = inlined_call_operand.vmem [shape: bf16[128,128], index: 5, kind: input, shape index: {}]   ;;  %s1936_s6 = inlined_call_operand.vmem [shape: f32[1,128], index: 6, kind: input, shape index: {}]   ;;  %s1937_s7 = inlined_call_operand.hbm [shape: bf16[128,128], index: 7, kind: input, shape index: {}]   ;;  %s1938_s8 = inlined_call_operand.vmem [shape: f32[1,128], index: 8, kind: input, shape index: {}]   ;;  %s1939_s9 = inlined_call_operand.hbm [shape: bf16[128,128], index: 9, kind: input, shape index: {}]   ;;  %s1940_s10 = inlined_call_operand.vmem [shape: f32[1,128], index: 10, kind: input, shape index: {}]   ;;  %s1941_s11 = inlined_call_operand.hbm [shape: bf16[128,128], index: 11, kind: input, shape index: {}]   ;;  %s1942_s12 = inlined_call_operand.vmem [shape: f32[1,128], index: 12, kind: input, shape index: {}]   ;;  %s1943_s13 = inlined_call_operand.hbm [shape: f32[8,128], index: 13, kind: output, shape index: {}]  }
   0x1   :  { %19 = vsyncpa [#allocation6], 0 }
   0x2   :  { %20 = vsyncpa [#allocation9], 0 }
   0x3   :  { %21 = vsyncpa [#allocation4], 0  ;;  %s51_s27 = sshll.u32 %s1937_s7, 4  ;;  %s1757_s28 = smov [#allocation5]   ;;  %s52_s27 = int_to_ptr.hbm [resolvable:$true] %s51_s27 }
   0x4   :  { %s53_s29 = sshll.u32 %s1757_s28, 4  ;;  %s28_s15 = sshll.u32 %s1931_s1, 4  ;;  %s54_s29 = int_to_ptr.vmem [resolvable:$true] %s53_s29  ;;  %s29_s15 = int_to_ptr.hbm [resolvable:$true] %s28_s15 }
   0x5   :  { %s1758_s16 = smov 64   ;;  %s1759_s17 = smov 4  }
   0x6   :  { %59 = dma.hbm_to_vmem [thread:$0]  %s52_s27, 1024, %s54_s29, [#allocation6], %s1758_s16, %s1758_s16, %s1759_s17  }
   0x7   :  { %s1760_s18 = smov [#allocation2]   ;;  %s66_s22 = sshll.u32 %s1939_s9, 4  ;;  %s67_s22 = int_to_ptr.hbm [resolvable:$true] %s66_s22 }
   0x8   :  { %s30_s19 = sshll.u32 %s1760_s18, 4  ;;  %s81_s24 = sshll.u32 %s1941_s11, 4  ;;  %s31_s19 = int_to_ptr.vmem [resolvable:$true] %s30_s19  ;;  %s82_s24 = int_to_ptr.hbm [resolvable:$true] %s81_s24 }
   0x9   :  { %36 = dma.hbm_to_vmem [thread:$0]  %s29_s15, 7168, %s31_s19, [#allocation3], %s1758_s16, %s1758_s16, %s1759_s17  }
   0xa   :  { %s1761_s25 = smov [#allocation7]   ;;  %s1762_s1 = smov [#allocation8]  }
   0xb   :  { %s68_s26 = sshll.u32 %s1761_s25, 4  ;;  %s83_s27 = sshll.u32 %s1762_s1, 4  ;;  %s69_s26 = int_to_ptr.vmem [resolvable:$true] %s68_s26  ;;  %s84_s27 = int_to_ptr.vmem [resolvable:$true] %s83_s27 }
   0xc   :  { %74 = dma.hbm_to_vmem [thread:$0]  %s67_s22, 1024, %s69_s26, [#allocation6], %s1758_s16, %s1758_s16, %s1759_s17  }
   0xd   :  { %89 = dma.hbm_to_vmem [thread:$0]  %s82_s24, 1024, %s84_s27, [#allocation9], %s1758_s16, %s1758_s16, %s1759_s17  }
   0xe   :  { %1749 = dma.done.wait [#allocation3], 7168  }
   0xf   :  { %1750 = vsyncadd [#allocation3], 4294960128 }
  0x10   :  { %1751 = dma.done.wait [#allocation6], 2048  }
  0x11   :  { %1752 = vsyncadd [#allocation6], 4294965248 }
  0x12   :  { %1753 = dma.done.wait [#allocation9], 1024  }
  0x13   :  { %1754 = vsyncadd [#allocation9], 4294966272  ;;  %v1523_v0 = vld [vmem:[#allocation2 + $0x38] sm:$0xff]  ;;  %v1522_v3 = vld [vmem:[#allocation2 + $0x30] sm:$0xff]  ;;  %s1120_s30 = sshll.u32 %s1943_s13, 4  ;;  %s1121_s30 = int_to_ptr.hbm [resolvable:$true] %s1120_s30 }
  0x14   :  { %v1531_v1 = vld [vmem:[#allocation2 + $0x78] sm:$0xff]  ;;  %589 = vmatpush.bf16.msra.mxu0 %v1523_v0  ;;  %v1530_v4 = vld [vmem:[#allocation2 + $0x70] sm:$0xff]  ;;  %v1521_v7 = vld [vmem:[#allocation2 + $0x28] sm:$0xff] }
  0x15   :  { %v1539_v2 = vld [vmem:[#allocation2 + $0xb8] sm:$0xff]  ;;  %602 = vmatpush.bf16.msra.mxu1 %v1531_v1  ;;  %v1538_v5 = vld [vmem:[#allocation2 + $0xb0] sm:$0xff]  ;;  %v1529_v8 = vld [vmem:[#allocation2 + $0x68] sm:$0xff] }
  0x16   :  { %615 = vmatpush.bf16.msra.mxu2 %v1539_v2  ;;  %v1547_v6 = vld [vmem:[#allocation2 + $0xf8] sm:$0xff]  ;;  %v1537_v9 = vld [vmem:[#allocation2 + $0xa8] sm:$0xff]  ;;  %v1546_v10 = vld [vmem:[#allocation2 + $0xf0] sm:$0xff] }
  0x17   :  { %628 = vmatpush.bf16.msra.mxu3 %v1547_v6  ;;  %v1520_v11 = vld [vmem:[#allocation2 + $0x20] sm:$0xff]  ;;  %v1545_v14 = vld [vmem:[#allocation2 + $0xe8] sm:$0xff]  ;;  %v1519_v15 = vld [vmem:[#allocation2 + $0x18] sm:$0xff] }
  0x18   :  { %590 = vmatpush.bf16.msra.mxu0 %v1522_v3  ;;  %v1528_v12 = vld [vmem:[#allocation2 + $0x60] sm:$0xff]  ;;  %v1527_v16 = vld [vmem:[#allocation2 + $0x58] sm:$0xff]  ;;  %v1518_v19 = vld [vmem:[#allocation2 + $0x10] sm:$0xff] }
  0x19   :  { %603 = vmatpush.bf16.msra.mxu1 %v1530_v4  ;;  %v1536_v13 = vld [vmem:[#allocation2 + $0xa0] sm:$0xff]  ;;  %v1535_v17 = vld [vmem:[#allocation2 + $0x98] sm:$0xff]  ;;  %v1526_v20 = vld [vmem:[#allocation2 + $0x50] sm:$0xff] }
  0x1a   :  { %616 = vmatpush.bf16.msra.mxu2 %v1538_v5  ;;  %v1544_v18 = vld [vmem:[#allocation2 + $0xe0] sm:$0xff]  ;;  %v1534_v21 = vld [vmem:[#allocation2 + $0x90] sm:$0xff]  ;;  %v1543_v22 = vld [vmem:[#allocation2 + $0xd8] sm:$0xff] }
  0x1b   :  { %629 = vmatpush.bf16.msra.mxu3 %v1546_v10  ;;  %v1517_v23 = vld [vmem:[#allocation2 + $0x8] sm:$0xff]  ;;  %v108_v25 = vld [vmem:[%s1930_s0] sm:$0xff]  ;;  %v1542_v27 = vld [vmem:[#allocation2 + $0xd0] sm:$0xff] }
  0x1c   :  { %591 = vmatpush.bf16.msra.mxu0 %v1521_v7  ;;  %v1525_v24 = vld [vmem:[#allocation2 + $0x48] sm:$0xff]  ;;  %v232_v29 = vunpack.c.l.b16 %v108_v25  ;;  %v1516_v30 = vld [vmem:[#allocation2] sm:$0xff]  ;;  %v233_v33 = vunpack.c.h.b16 %v108_v25  ;;  %v1555_v35 = vld [vmem:[#allocation2 + $0x138] sm:$0xff] }
  0x1d   :  { %604 = vmatpush.bf16.msra.mxu1 %v1529_v8  ;;  %v1533_v26 = vld [vmem:[#allocation2 + $0x88] sm:$0xff]  ;;  %v1524_v31 = vld [vmem:[#allocation2 + $0x40] sm:$0xff]  ;;  %v1563_v36 = vld [vmem:[#allocation2 + $0x178] sm:$0xff] }
  0x1e   :  { %617 = vmatpush.bf16.msra.mxu2 %v1537_v9  ;;  %v109_v28 = vld [vmem:[%s1930_s0 + $0x8] sm:$0xff]  ;;  %v1532_v34 = vld [vmem:[#allocation2 + $0x80] sm:$0xff]  ;;  %v1571_v37 = vld [vmem:[#allocation2 + $0x1b8] sm:$0xff]  ;;  %v239_v38 = vpack.c.b16 %v232_v29, %v232_v29  ;;  %v240_v41 = vpack.c.b16 %v233_v33, %v233_v33 }
  0x1f   :  { %630 = vmatpush.bf16.msra.mxu3 %v1545_v14  ;;  %v234_v32 = vunpack.c.l.b16 %v109_v28  ;;  %v1541_v39 = vld [vmem:[#allocation2 + $0xc8] sm:$0xff]  ;;  %v1554_v42 = vld [vmem:[#allocation2 + $0x130] sm:$0xff]  ;;  %v1540_v45 = vld [vmem:[#allocation2 + $0xc0] sm:$0xff]  ;;  %v235_v46 = vunpack.c.h.b16 %v109_v28 }
  0x20   :  { %592 = vmatpush.bf16.msra.mxu0 %v1520_v11  ;;  %v1562_v43 = vld [vmem:[#allocation2 + $0x170] sm:$0xff]  ;;  %v1553_v47 = vld [vmem:[#allocation2 + $0x128] sm:$0xff]  ;;  %v1552_v51 = vld [vmem:[#allocation2 + $0x120] sm:$0xff] }
  0x21   :  { %605 = vmatpush.bf16.msra.mxu1 %v1528_v12  ;;  %v241_v40 = vpack.c.b16 %v234_v32, %v234_v32  ;;  %v1570_v44 = vld [vmem:[#allocation2 + $0x1b0] sm:$0xff]  ;;  %v1561_v48 = vld [vmem:[#allocation2 + $0x168] sm:$0xff]  ;;  %v242_v50 = vpack.c.b16 %v235_v46, %v235_v46  ;;  %v1560_v52 = vld [vmem:[#allocation2 + $0x160] sm:$0xff] }
  0x22   :  { %618 = vmatpush.bf16.msra.mxu2 %v1536_v13  ;;  %v1569_v49 = vld [vmem:[#allocation2 + $0x1a8] sm:$0xff]  ;;  %v1568_v53 = vld [vmem:[#allocation2 + $0x1a0] sm:$0xff]  ;;  %v1551_v54 = vld [vmem:[#allocation2 + $0x118] sm:$0xff] }
  0x23   :  { %631 = vmatpush.bf16.msra.mxu3 %v1544_v18  ;;  %v1559_v55 = vld [vmem:[#allocation2 + $0x158] sm:$0xff]  ;;  %v1550_v57 = vld [vmem:[#allocation2 + $0x110] sm:$0xff]  ;;  %v1549_v60 = vld [vmem:[#allocation2 + $0x108] sm:$0xff] }
  0x24   :  { %593 = vmatpush.bf16.msra.mxu0 %v1519_v15  ;;  %v1567_v56 = vld [vmem:[#allocation2 + $0x198] sm:$0xff]  ;;  %v1558_v58 = vld [vmem:[#allocation2 + $0x150] sm:$0xff]  ;;  %v1557_v62 = vld [vmem:[#allocation2 + $0x148] sm:$0xff] }
  0x25   :  { %606 = vmatpush.bf16.msra.mxu1 %v1527_v16  ;;  %v1566_v59 = vld [vmem:[#allocation2 + $0x190] sm:$0xff]  ;;  %v1565_v63 = vld [vmem:[#allocation2 + $0x188] sm:$0xff]  ;;  %v111_v0 = vld [vmem:[%s1930_s0 + $0x18] sm:$0xf] }
  0x26   :  { %619 = vmatpush.bf16.msra.mxu2 %v1535_v17  ;;  %v110_v61 = vld [vmem:[%s1930_s0 + $0x10] sm:$0xff]  ;;  %v1548_v2 = vld [vmem:[#allocation2 + $0x100] sm:$0xff]  ;;  %v238_v4 = vunpack.c.l.b16 %v111_v0  ;;  %v1579_v10 = vld [vmem:[%s1933_s3 + $0x38] sm:$0xff] }
  0x27   :  { %632 = vmatpush.bf16.msra.mxu3 %v1543_v22  ;;  %v236_v1 = vunpack.c.l.b16 %v110_v61  ;;  %v237_v3 = vunpack.c.h.b16 %v110_v61  ;;  %v1556_v5 = vld [vmem:[#allocation2 + $0x140] sm:$0xff]  ;;  %v1578_v11 = vld [vmem:[%s1933_s3 + $0x30] sm:$0xff]  ;;  %v1577_v12 = vld [vmem:[%s1933_s3 + $0x28] sm:$0xff] }
  0x28   :  { %594 = vmatpush.bf16.msra.mxu0 %v1518_v19  ;;  %v1564_v6 = vld [vmem:[#allocation2 + $0x180] sm:$0xff]  ;;  %v245_v9 = vpack.c.b16 %v238_v4, %v238_v4  ;;  %v1575_v14 = vld [vmem:[%s1933_s3 + $0x18] sm:$0xff]  ;;  %v1574_v15 = vld [vmem:[%s1933_s3 + $0x10] sm:$0xff] }
  0x29   :  { %607 = vmatpush.bf16.msra.mxu1 %v1526_v20  ;;  %v243_v7 = vpack.c.b16 %v236_v1, %v236_v1  ;;  %v244_v8 = vpack.c.b16 %v237_v3, %v237_v3  ;;  %v1576_v13 = vld [vmem:[%s1933_s3 + $0x20] sm:$0xff]  ;;  %v1573_v18 = vld [vmem:[%s1933_s3 + $0x8] sm:$0xff]  ;;  %v1603_v0 = vld [vmem:[#allocation7 + $0x38] sm:$0xff] }
  0x2a   :  { %620 = vmatpush.bf16.msra.mxu2 %v1534_v21  ;;  %v1572_v19 = vld [vmem:[%s1933_s3] sm:$0xff]  ;;  %v1585_v29 = vld [vmem:[%s1935_s5 + $0x28] sm:$0xff]  ;;  %v1602_v1 = vld [vmem:[#allocation7 + $0x30] sm:$0xff] }
  0x2b   :  { %633 = vmatpush.bf16.msra.mxu3 %v1542_v27  ;;  %v1584_v32 = vld [vmem:[%s1935_s5 + $0x20] sm:$0xff]  ;;  %v1599_v4 = vld [vmem:[#allocation7 + $0x18] sm:$0xff] }
  0x2c   :  { %595 = vmatpush.bf16.msra.mxu0 %v1517_v23  ;;  %v1587_v23 = vld [vmem:[%s1935_s5 + $0x38] sm:$0xff]  ;;  %v1600_v3 = vld [vmem:[#allocation7 + $0x20] sm:$0xff] }
  0x2d   :  { %608 = vmatpush.bf16.msra.mxu1 %v1525_v24  ;;  %v1619_v24 = vld [vmem:[%s1932_s2] ss:$0 sm:$0xff] }
  0x2e   :  { %621 = vmatpush.bf16.msra.mxu2 %v1533_v26  ;;  %v1586_v26 = vld [vmem:[%s1935_s5 + $0x30] sm:$0xff] }
  0x2f   :  { %634 = vmatpush.bf16.msra.mxu3 %v1541_v39 }
  0x30   :  { %596 = vmatpush.bf16.msra.mxu0 %v1516_v30 }
  0x31   :  { %609 = vmatpush.bf16.msra.mxu1 %v1524_v31 }
  0x32   :  { %622 = vmatpush.bf16.msra.mxu2 %v1532_v34  ;;  %v1583_v34 = vld [vmem:[%s1935_s5 + $0x18] sm:$0xff] }
  0x33   :  { %597 = vmatmul.bf16.vlgmr.msra.gmra.mxu0 %v239_v38  ;;  %635 = vmatpush.bf16.msra.mxu3 %v1540_v45  ;;  %v1582_v38 = vld [vmem:[%s1935_s5 + $0x10] sm:$0xff] }
  0x34   :  { %641 = vmatpush.bf16.msrb.mxu0 %v1555_v35  ;;  %610 = vmatmul.bf16.vlgmr.msra.gmra.mxu1 %v240_v41 }
  0x35   :  { %654 = vmatpush.bf16.msrb.mxu1 %v1563_v36  ;;  %623 = vmatmul.bf16.vlgmr.msra.gmra.mxu2 %v241_v40 }
  0x36   :  { %667 = vmatpush.bf16.msrb.mxu2 %v1571_v37  ;;  %636 = vmatmul.bf16.vlgmr.msra.gmra.mxu3 %v242_v50  ;;  %v1595_v50 = vld [vmem:[#allocation5 + $0x38] sm:$0xff] }
  0x37   :  { %750 = vmatpush.bf16.msrb.mxu3 %v1579_v10 }
  0x38   :  { %642 = vmatpush.bf16.msrb.mxu0 %v1554_v42 }
  0x39   :  { %655 = vmatpush.bf16.msrb.mxu1 %v1562_v43 }
  0x3a   :  { %668 = vmatpush.bf16.msrb.mxu2 %v1570_v44 }
  0x3b   :  { %751 = vmatpush.bf16.msrb.mxu3 %v1578_v11 }
  0x3c   :  { %643 = vmatpush.bf16.msrb.mxu0 %v1553_v47 }
  0x3d   :  { %656 = vmatpush.bf16.msrb.mxu1 %v1561_v48  ;;  %v1581_v48 = vld [vmem:[%s1935_s5 + $0x8] sm:$0xff] }
  0x3e   :  { %669 = vmatpush.bf16.msrb.mxu2 %v1569_v49  ;;  %v1580_v49 = vld [vmem:[%s1935_s5] sm:$0xff] }
  0x3f   :  { %752 = vmatpush.bf16.msrb.mxu3 %v1577_v12  ;;  %v1597_v12 = vld [vmem:[#allocation7 + $0x8] sm:$0xff] }
  0x40   :  { %644 = vmatpush.bf16.msrb.mxu0 %v1552_v51  ;;  %v1594_v51 = vld [vmem:[#allocation5 + $0x30] sm:$0xff] }
  0x41   :  { %657 = vmatpush.bf16.msrb.mxu1 %v1560_v52  ;;  %v1593_v52 = vld [vmem:[#allocation5 + $0x28] sm:$0xff] }
  0x42   :  { %670 = vmatpush.bf16.msrb.mxu2 %v1568_v53  ;;  %v1592_v53 = vld [vmem:[#allocation5 + $0x20] sm:$0xff] }
  0x43   :  { %753 = vmatpush.bf16.msrb.mxu3 %v1576_v13  ;;  %v1596_v13 = vld [vmem:[#allocation7] sm:$0xff] }
  0x44   :  { %645 = vmatpush.bf16.msrb.mxu0 %v1551_v54  ;;  %v1591_v54 = vld [vmem:[#allocation5 + $0x18] sm:$0xff] }
  0x45   :  { %658 = vmatpush.bf16.msrb.mxu1 %v1559_v55  ;;  %v1590_v55 = vld [vmem:[#allocation5 + $0x10] sm:$0xff] }
  0x46   :  { %671 = vmatpush.bf16.msrb.mxu2 %v1567_v56  ;;  %v1620_v56 = vld [vmem:[%s1934_s4] ss:$0 sm:$0xff] }
  0x47   :  { %754 = vmatpush.bf16.msrb.mxu3 %v1575_v14  ;;  %v1611_v14 = vld [vmem:[#allocation8 + $0x38] sm:$0xff] }
  0x48   :  { %646 = vmatpush.bf16.msrb.mxu0 %v1550_v57 }
  0x49   :  { %659 = vmatpush.bf16.msrb.mxu1 %v1558_v58 }
  0x4a   :  { %672 = vmatpush.bf16.msrb.mxu2 %v1566_v59 }
  0x4b   :  { %755 = vmatpush.bf16.msrb.mxu3 %v1574_v15  ;;  %v1610_v15 = vld [vmem:[#allocation8 + $0x30] sm:$0xff] }
  0x4c   :  { %647 = vmatpush.bf16.msrb.mxu0 %v1549_v60 }
  0x4d   :  { %660 = vmatpush.bf16.msrb.mxu1 %v1557_v62  ;;  %v1589_v62 = vld [vmem:[#allocation5 + $0x8] sm:$0xff] }
  0x4e   :  { %673 = vmatpush.bf16.msrb.mxu2 %v1565_v63  ;;  %v1588_v63 = vld [vmem:[#allocation5] sm:$0xff] }
  0x4f   :  { %756 = vmatpush.bf16.msrb.mxu3 %v1573_v18  ;;  %v1607_v18 = vld [vmem:[#allocation8 + $0x18] sm:$0xff] }
  0x50   :  { %648 = vmatpush.bf16.msrb.mxu0 %v1548_v2  ;;  %v1601_v2 = vld [vmem:[#allocation7 + $0x28] sm:$0xff] }
  0x51   :  { %661 = vmatpush.bf16.msrb.mxu1 %v1556_v5  ;;  %v1598_v5 = vld [vmem:[#allocation7 + $0x10] sm:$0xff] }
  0x52   :  { %674 = vmatpush.bf16.msrb.mxu2 %v1564_v6  ;;  %v1621_v6 = vld [vmem:[%s1936_s6] ss:$0 sm:$0xff] }
  0x53   :  { %649 = vmatmul.bf16.vlgmr.msrb.gmra.mxu0 %v243_v7  ;;  %757 = vmatpush.bf16.msrb.mxu3 %v1572_v19  ;;  %v1606_v19 = vld [vmem:[#allocation8 + $0x10] sm:$0xff] }
  0x54   :  { %662 = vmatmul.bf16.vlgmr.msrb.gmra.mxu1 %v244_v8  ;;  %833 = vmatpush.bf16.msra.mxu0 %v1587_v23 }
  0x55   :  { %675 = vmatmul.bf16.vlgmr.msrb.gmra.mxu2 %v245_v9  ;;  %916 = vmatpush.bf16.msra.mxu1 %v1595_v50 }
  0x56   :  { %999 = vmatpush.bf16.msra.mxu2 %v1603_v0 }
  0x57   :  { %1082 = vmatpush.bf16.msra.mxu3 %v1611_v14 }
  0x58   :  { %834 = vmatpush.bf16.msra.mxu0 %v1586_v26  ;;  %v1605_v26 = vld [vmem:[#allocation8 + $0x8] sm:$0xff] }
  0x59   :  { %917 = vmatpush.bf16.msra.mxu1 %v1594_v51 }
  0x5a   :  { %1000 = vmatpush.bf16.msra.mxu2 %v1602_v1 }
  0x5b   :  { %1083 = vmatpush.bf16.msra.mxu3 %v1610_v15 }
  0x5c   :  { %835 = vmatpush.bf16.msra.mxu0 %v1585_v29 }
  0x5d   :  { %918 = vmatpush.bf16.msra.mxu1 %v1593_v52 }
  0x5e   :  { %1001 = vmatpush.bf16.msra.mxu2 %v1601_v2 }
  0x60   :  { %836 = vmatpush.bf16.msra.mxu0 %v1584_v32 }
  0x61   :  { %919 = vmatpush.bf16.msra.mxu1 %v1592_v53 }
  0x62   :  { %1002 = vmatpush.bf16.msra.mxu2 %v1600_v3 }
  0x64   :  { %837 = vmatpush.bf16.msra.mxu0 %v1583_v34  ;;  %v1095_v34 = vlaneseq }
  0x65   :  { %920 = vmatpush.bf16.msra.mxu1 %v1591_v54 }
  0x66   :  { %1003 = vmatpush.bf16.msra.mxu2 %v1599_v4 }
  0x68   :  { %838 = vmatpush.bf16.msra.mxu0 %v1582_v38 }
  0x69   :  { %921 = vmatpush.bf16.msra.mxu1 %v1590_v55 }
  0x6a   :  { %1004 = vmatpush.bf16.msra.mxu2 %v1598_v5 }
  0x6c   :  { %839 = vmatpush.bf16.msra.mxu0 %v1581_v48 }
  0x6d   :  { %922 = vmatpush.bf16.msra.mxu1 %v1589_v62 }
  0x6e   :  { %1005 = vmatpush.bf16.msra.mxu2 %v1597_v12 }
  0x70   :  { %840 = vmatpush.bf16.msra.mxu0 %v1580_v49 }
  0x71   :  { %923 = vmatpush.bf16.msra.mxu1 %v1588_v63 }
  0x72   :  { %1006 = vmatpush.bf16.msra.mxu2 %v1596_v13 }
  0xb0   :  { %v598_v16 = vpop.f32.mrf.mxu0 }
  0xb1   :  { %v611_v17 = vpop.f32.mrf.mxu1  ;;  %v599_v28 = vadd.f32 %v1619_v24, %v598_v16  ;;  %v1609_v16 = vld [vmem:[#allocation8 + $0x28] sm:$0xff] }
  0xb2   :  { %1084 = vmatpush.bf16.msra.mxu3 %v1609_v16 }
  0xb3   :  { %v612_v30 = vadd.f32 %v611_v17, %v599_v28  ;;  %v1608_v17 = vld [vmem:[#allocation8 + $0x20] sm:$0xff] }
  0xb4   :  { %v1623_v28 = vld [vmem:[%s1940_s10] ss:$0 sm:$0xff]  ;;  %s1763_s10 = smov [#allocation10]  }
  0xb6   :  { %1085 = vmatpush.bf16.msra.mxu3 %v1608_v17 }
  0xb8   :  { %v624_v20 = vpop.f32.mrf.mxu2  ;;  %v600_v21 = vpop.f32.mrf.mxu0 }
  0xb9   :  { %v613_v22 = vpop.f32.mrf.mxu1  ;;  %v637_v25 = vpop.f32.mrf.mxu3  ;;  %v625_v33 = vadd.f32 %v624_v20, %v612_v30  ;;  %v1622_v20 = vld [vmem:[%s1938_s8] ss:$0 sm:$0xff] }
  0xba   :  { %1086 = vmatpush.bf16.msra.mxu3 %v1607_v18 }
  0xbb   :  { %v638_v35 = vadd.f32 %v637_v25, %v625_v33 }
  0xbe   :  { %1087 = vmatpush.bf16.msra.mxu3 %v1606_v19 }
  0xc0   :  { %v626_v27 = vpop.f32.mrf.mxu2 }
  0xc1   :  { %v639_v31 = vpop.f32.mrf.mxu3  ;;  %v1604_v27 = vld [vmem:[#allocation8] sm:$0xff] }
  0xc2   :  { %1088 = vmatpush.bf16.msra.mxu3 %v1605_v26 }
  0xc6   :  { %1089 = vmatpush.bf16.msra.mxu3 %v1604_v27 }
  0xd0   :  { %v650_v36 = vpop.f32.mrf.mxu0 }
  0xd1   :  { %v663_v37 = vpop.f32.mrf.mxu1  ;;  %v651_v39 = vadd.f32 %v650_v36, %v638_v35  ;;  %v1096_v35 = vand.u32 127, %v1095_v34  ;;  %v1624_v36 = vld [vmem:[%s1942_s12] ss:$0 sm:$0xff]  ;;  %s1118_s12 = sshll.u32 %s1763_s10, 4  ;;  %s1119_s12 = int_to_ptr.vmem [resolvable:$true] %s1118_s12 }
  0xd3   :  { %v664_v40 = vadd.f32 %v663_v37, %v651_v39  ;;  %vm1097_vm0 = vcmp.lt.s32.totalorder %v1096_v35, 10 }
  0xd8   :  { %v676_v41 = vpop.f32.mrf.mxu2  ;;  %v652_v43 = vpop.f32.mrf.mxu0 }
  0xd9   :  { %v677_v42 = vadd.f32 %v676_v41, %v664_v40  ;;  %v665_v44 = vpop.f32.mrf.mxu1 }
  0xdb   :  { %v680_v45 = vmax.f32 %v677_v42, 0.0 }
  0xdd   :  { %v681_v46 = vpack.c.bf16 %v680_v45, %v680_v45 }
  0xdf   :  { %758 = vmatmul.bf16.vlgmr.msrb.gmra.mxu3 %v681_v46 }
  0xe0   :  { %v678_v47 = vpop.f32.mrf.mxu2 }
 0x162   :  { %v759_v57 = vpop.f32.mrf.mxu3 }
 0x163   :  { %v760_v58 = vadd.f32 %v1620_v56, %v759_v57 }
 0x165   :  { %v763_v59 = vmax.f32 %v760_v58, 0.0 }
 0x167   :  { %v764_v60 = vpack.c.bf16 %v763_v59, %v763_v59 }
 0x169   :  { %841 = vmatmul.bf16.vlgmr.msra.gmra.mxu0 %v764_v60 }
 0x16a   :  { %v761_v61 = vpop.f32.mrf.mxu3 }
 0x1e6   :  { %v842_v7 = vpop.f32.mrf.mxu0 }
 0x1e7   :  { %v843_v8 = vadd.f32 %v1621_v6, %v842_v7 }
 0x1e9   :  { %v846_v9 = vmax.f32 %v843_v8, 0.0 }
 0x1eb   :  { %v847_v10 = vpack.c.bf16 %v846_v9, %v846_v9 }
 0x1ed   :  { %924 = vmatmul.bf16.vlgmr.msra.gmra.mxu1 %v847_v10 }
 0x1ee   :  { %v844_v11 = vpop.f32.mrf.mxu0 }
 0x26a   :  { %v925_v21 = vpop.f32.mrf.mxu1 }
 0x26b   :  { %v926_v22 = vadd.f32 %v1622_v20, %v925_v21 }
 0x26d   :  { %v929_v23 = vmax.f32 %v926_v22, 0.0 }
 0x26f   :  { %v930_v24 = vpack.c.bf16 %v929_v23, %v929_v23 }
 0x271   :  { %1007 = vmatmul.bf16.vlgmr.msra.gmra.mxu2 %v930_v24 }
 0x272   :  { %v927_v25 = vpop.f32.mrf.mxu1 }
 0x2f4   :  { %v1008_v29 = vpop.f32.mrf.mxu2 }
 0x2f5   :  { %v1009_v30 = vadd.f32 %v1623_v28, %v1008_v29 }
 0x2f7   :  { %v1012_v31 = vmax.f32 %v1009_v30, 0.0 }
 0x2f9   :  { %v1013_v32 = vpack.c.bf16 %v1012_v31, %v1012_v31 }
 0x2fb   :  { %1090 = vmatmul.bf16.vlgmr.msra.gmra.mxu3 %v1013_v32 }
 0x2fc   :  { %v1010_v33 = vpop.f32.mrf.mxu2 }
 0x37e   :  { %v1091_v37 = vpop.f32.mrf.mxu3 }
 0x37f   :  { %v1092_v38 = vadd.f32 %v1624_v36, %v1091_v37 }
 0x381   :  { %v1098_v39 = vsel %vm1097_vm0, %v1092_v38, -1e+30 }
 0x382   :  { %1099 = vmax.xlane.f32.xlu0 %v1098_v39 }
 0x386   :  { %v1093_v40 = vpop.f32.mrf.mxu3 }
 0x3f5   :  { %v1100_v41 = vpop.xlane.xlu0 %1099 }
 0x3f6   :  { %v1101_v42 = vsub.f32 %v1098_v39, %v1100_v41 }
 0x3f8   :  { %v1102_v43 = vmul.f32 1.442695, %v1101_v42 }
 0x3fa   :  { %1625 = vpow2.f32 %v1102_v43 }
 0x400   :  { %v1626_v44 = vpop.eup %1625 }
 0x401   :  { %v1104_v45 = vsel %vm1097_vm0, %v1626_v44, 0.0 }
 0x402   :  { %1105 = vadd.xlane.f32.xlu0 %v1104_v45 }
 0x475   :  { %v1106_v46 = vpop.xlane.xlu0 %1105 }
 0x476   :  { %1627 = vlog2.f32 %v1106_v46 }
 0x47c   :  { %v1628_v47 = vpop.eup %1627 }
 0x47d   :  { %v1108_v48 = vmul.f32 0.6931472, %v1628_v47 }
 0x47f   :  { %v1109_v49 = vadd.f32 %v1108_v48, %v1100_v41 }
 0x481   :  { %v1110_v50 = vsub.f32 %v1092_v38, %v1109_v49 }
 0x483   :  { %v1111_v51 = vsel %vm1097_vm0, %v1110_v50, 0.0 }
 0x484   :  { %1112 = vst [vmem:[#allocation10] sm:$0xff] %v1111_v51 }
 0x485   :  { %1123 = dma.vmem_to_hbm [thread:$0]  %s1119_s12, 128, %s1121_s30, [#allocation4]  }
 0x486   :  { %1755 = dma.done.wait [#allocation4], 128  }
 0x487   :  { %1756 = vsyncadd [#allocation4], 4294967168 }
 0x488   :  { %1128 = vsyncpa [#allocation3], 1 }
 0x489   :  { %1129 = vsyncpa [#allocation6], 1 }
 0x48a   :  { %1130 = vsyncpa [#allocation9], 1 }
 0x48b   :  { %1131 = vsyncpa [#allocation4], 1 }

</bundles_post_ra>
